<compile_context>
chip_gen: v5e
topology: v5e:2x2
jax: 0.10.0
libtpu: 0.0.40
codegen_flags: <defaults>
</compile_context>

<pallas_src>
import jax
import jax.numpy as jnp
from jax import lax
from jax.experimental import pallas as pl
from jax.experimental.pallas import tpu as pltpu

EPS = 1e-5
LANE = 128   # lane quantum
SUB = 8      # f32 sublane quantum
ROW_Q = 16   # row-tile quantum (covers bf16 sublane packing too)


# ---------------------------------------------------------------------------
# helpers
# ---------------------------------------------------------------------------
def _rup(x, m):
    return ((x + m - 1) // m) * m


def _arr_bytes(shape, itemsize):
    """VMEM footprint estimate with (sublane, lane) padding of the trailing two dims."""
    r = _rup(int(shape[-2]), SUB) * _rup(int(shape[-1]), LANE)
    for d in shape[:-2]:
        r *= int(d)
    return int(r) * itemsize


def _vmem_cap_bytes():
    """Generation-aware physical VMEM capacity (64 MiB on v7x, 128 MiB on v5e/v6e)."""
    try:
        info = pltpu.get_tpu_info()
        cap = int(getattr(info, "vmem_capacity_bytes", 0) or 0)
        if cap > 0:
            return cap
    except Exception:
        pass
    return 128 << 20


def _mosaic_params(vmem_need_bytes, grid_rank=1):
    """Parallel grid axes + VMEM limit derived from tile sizes, capped at 75% of physical VMEM."""
    cap = _vmem_cap_bytes()
    limit = int(min(max(vmem_need_bytes + (4 << 20), 16 << 20), (cap * 3) // 4))
    return pltpu.CompilerParams(
        dimension_semantics=("parallel",) * grid_rank,
        vmem_limit_bytes=limit)


def _pick_row_tile(M, bytes_per_row, fixed_bytes):
    """Row tile for the flattened (rows, C) stages.

    As large as the (generation-aware) VMEM budget allows (amortizes per-grid-step overhead),
    multiple of 16 so bf16 blocks stay tile-aligned, and split into >=2 grid steps when possible
    so the BlockSpec pipeline overlaps DMA with compute.  The tile is shrunk (not just the
    reported limit clamped) when the footprint would exceed the budget.
    """
    if M <= ROW_Q:
        return M
    cap = _vmem_cap_bytes()
    budget = max((cap * 3) // 8 - fixed_bytes, 2 << 20)
    t = budget // max(bytes_per_row, 1)
    t = min(t, 4096)
    t = max(ROW_Q, (t // ROW_Q) * ROW_Q)
    if t >= M:
        t = min(t, max(ROW_Q, _rup((M + 1) // 2, ROW_Q)))
    return int(t)


def _fold(gamma_p, beta_p, sum_c, sumsq_c, count):
    """Fold training-mode (biased) BN stats into per-channel scale/bias (f32, shape (1, C)).

    NOTE: one-pass variance (E[x^2] - mean^2) in f32 from the in-kernel partial sums; adequate
    for activation-scale data (partial sums accumulated in f32).
    """
    mean = sum_c / count
    var = jnp.maximum(sumsq_c / count - jnp.square(mean), 0.0)
    inv = lax.rsqrt(var + EPS)
    scale = gamma_p.astype(jnp.float32) * inv
    bias = beta_p.astype(jnp.float32) - mean * scale
    return scale.reshape(1, -1), bias.reshape(1, -1)


# ---------------------------------------------------------------------------
# stage kernels
# ---------------------------------------------------------------------------
def _linear_bn_relu_stats(x2d, scale, bias, w_bf16):
    """(rows, Cin) bf16 -> relu(x*scale+bias) @ W as bf16 (rows, Cout)
    plus per-tile partial (sum, sum-of-squares) of the f32 result for the next BN."""
    M, Cin = x2d.shape
    Cout = w_bf16.shape[1]
    per_row = 4 * Cin + 4 * Cout + 4 * Cin + 4 * Cout + 2 * Cin   # dbuf bf16 io + f32/bf16 temps
    fixed = 2 * _arr_bytes((Cin, Cout), 2) + (2 << 20)
    TR = _pick_row_tile(M, per_row, fixed)
    nt = (M + TR - 1) // TR
    need_mask = (M % TR) != 0

    def kernel(x_ref, s_ref, b_ref, w_ref, o_ref, st_ref):
        a = jnp.maximum(x_ref[...].astype(jnp.float32) * s_ref[...] + b_ref[...], 0.0)
        h = jnp.dot(a.astype(jnp.bfloat16), w_ref[...],
                    preferred_element_type=jnp.float32)
        o_ref[...] = h.astype(jnp.bfloat16)
        if need_mask:   # last partial tile: keep garbage rows out of the statistics
            row = (pl.program_id(0) * TR
                   + lax.broadcasted_iota(jnp.int32, (TR, Cout), 0))
            h = jnp.where(row < M, h, 0.0)
        st_ref[0, 0:1, :] = jnp.sum(h, axis=0, keepdims=True)
        st_ref[0, 1:2, :] = jnp.sum(h * h, axis=0, keepdims=True)

    vmem_need = (2 * (_arr_bytes((TR, Cin), 2) + _arr_bytes((TR, Cout), 2))
                 + 2 * _arr_bytes((Cin, Cout), 2)
                 + 2 * _arr_bytes((8, Cout), 4)
                 + _arr_bytes((TR, Cin), 4) + _arr_bytes((TR, Cout), 4)
                 + 4 * _arr_bytes((1, Cin), 4))
    return pl.pallas_call(
        kernel,
        out_shape=(jax.ShapeDtypeStruct((M, Cout), jnp.bfloat16),
                   jax.ShapeDtypeStruct((nt, 8, Cout), jnp.float32)),
        grid=(nt,),
        in_specs=[pl.BlockSpec((TR, Cin), lambda i: (i, 0)),
                  pl.BlockSpec((1, Cin), lambda i: (0, 0)),
                  pl.BlockSpec((1, Cin), lambda i: (0, 0)),
                  pl.BlockSpec((Cin, Cout), lambda i: (0, 0))],
        out_specs=(pl.BlockSpec((TR, Cout), lambda i: (i, 0)),
                   pl.BlockSpec((1, 8, Cout), lambda i: (i, 0, 0))),
        compiler_params=_mosaic_params(vmem_need),
    )(x2d, scale, bias, w_bf16)


def _linear_bn_relu_add(x2d, res2d, scale, bias, w_bf16):
    """relu(x*scale+bias) @ W + res   (identity / UP residual), f32 output."""
    M, Cin = x2d.shape
    Cout = w_bf16.shape[1]
    per_row = 4 * Cin + 4 * Cout + 8 * Cout + 4 * Cin + 2 * Cin + 4 * Cout
    fixed = 2 * _arr_bytes((Cin, Cout), 2) + (2 << 20)
    TR = _pick_row_tile(M, per_row, fixed)
    nt = (M + TR - 1) // TR

    def kernel(x_ref, r_ref, s_ref, b_ref, w_ref, o_ref):
        a = jnp.maximum(x_ref[...].astype(jnp.float32) * s_ref[...] + b_ref[...], 0.0)
        o_ref[...] = (jnp.dot(a.astype(jnp.bfloat16), w_ref[...],
                              preferred_element_type=jnp.float32)
                      + r_ref[...].astype(jnp.float32))

    vmem_need = (2 * (_arr_bytes((TR, Cin), 2) + _arr_bytes((TR, Cout), 2)
                      + _arr_bytes((TR, Cout), 4))
                 + 2 * _arr_bytes((Cin, Cout), 2)
                 + _arr_bytes((TR, Cin), 4) + _arr_bytes((TR, Cout), 4)
                 + 4 * _arr_bytes((1, Cin), 4))
    return pl.pallas_call(
        kernel,
        out_shape=jax.ShapeDtypeStruct((M, Cout), jnp.float32),
        grid=(nt,),
        in_specs=[pl.BlockSpec((TR, Cin), lambda i: (i, 0)),
                  pl.BlockSpec((TR, Cout), lambda i: (i, 0)),
                  pl.BlockSpec((1, Cin), lambda i: (0, 0)),
                  pl.BlockSpec((1, Cin), lambda i: (0, 0)),
                  pl.BlockSpec((Cin, Cout), lambda i: (0, 0))],
        out_specs=pl.BlockSpec((TR, Cout), lambda i: (i, 0)),
        compiler_params=_mosaic_params(vmem_need),
    )(x2d, res2d, scale, bias, w_bf16)


def _linear_bn_relu_shortcut(h2d, xs2d, s3, b3, ss, bs, w3_bf16, ws_bf16):
    """relu(h*s3+b3) @ W3  +  relu(xs*ss+bs) @ Ws   (BN+ReLU+1x1-conv shortcut fused)."""
    M, Cmid = h2d.shape
    Cin = xs2d.shape[1]
    Cout = w3_bf16.shape[1]
    per_row = 4 * Cmid + 4 * Cin + 8 * Cout + 4 * (Cmid + Cin) + 2 * (Cmid + Cin) + 8 * Cout
    fixed = 2 * (_arr_bytes((Cmid, Cout), 2) + _arr_bytes((Cin, Cout), 2)) + (2 << 20)
    TR = _pick_row_tile(M, per_row, fixed)
    nt = (M + TR - 1) // TR

    def kernel(h_ref, x_ref, s3_ref, b3_ref, ss_ref, bs_ref, w3_ref, ws_ref, o_ref):
        a = jnp.maximum(h_ref[...].astype(jnp.float32) * s3_ref[...] + b3_ref[...], 0.0)
        acc = jnp.dot(a.astype(jnp.bfloat16), w3_ref[...],
                      preferred_element_type=jnp.float32)
        r = jnp.maximum(x_ref[...].astype(jnp.float32) * ss_ref[...] + bs_ref[...], 0.0)
        o_ref[...] = acc + jnp.dot(r.astype(jnp.bfloat16), ws_ref[...],
                                   preferred_element_type=jnp.float32)

    vmem_need = (2 * (_arr_bytes((TR, Cmid), 2) + _arr_bytes((TR, Cin), 2)
                      + _arr_bytes((TR, Cout), 4))
                 + 2 * (_arr_bytes((Cmid, Cout), 2) + _arr_bytes((Cin, Cout), 2))
                 + _arr_bytes((TR, Cmid), 4) + _arr_bytes((TR, Cin), 4)
                 + 2 * _arr_bytes((TR, Cout), 4)
                 + 8 * _arr_bytes((1, Cin), 4))
    return pl.pallas_call(
        kernel,
        out_shape=jax.ShapeDtypeStruct((M, Cout), jnp.float32),
        grid=(nt,),
        in_specs=[pl.BlockSpec((TR, Cmid), lambda i: (i, 0)),
                  pl.BlockSpec((TR, Cin), lambda i: (i, 0)),
                  pl.BlockSpec((1, Cmid), lambda i: (0, 0)),
                  pl.BlockSpec((1, Cmid), lambda i: (0, 0)),
                  pl.BlockSpec((1, Cin), lambda i: (0, 0)),
                  pl.BlockSpec((1, Cin), lambda i: (0, 0)),
                  pl.BlockSpec((Cmid, Cout), lambda i: (0, 0)),
                  pl.BlockSpec((Cin, Cout), lambda i: (0, 0))],
        out_specs=pl.BlockSpec((TR, Cout), lambda i: (i, 0)),
        compiler_params=_mosaic_params(vmem_need),
    )(h2d, xs2d, s3, b3, ss, bs, w3_bf16, ws_bf16)


def _conv3x3_bn_relu_stats(h1, scale, bias, w2r_bf16, stride, dilation):
    """relu(h1*scale+bias) -> 3x3 conv (stride, dilation, padding=dilation), bf16 output,
    plus per-image partial (sum, sum-of-squares) of the f32 result for bn3.

    Grid over batch; per image: bf16 padded VMEM scratch with border-only zeroing, im2col slab
    (9 windows concatenated on the lane axis) and a single K=9*C MXU matmul.
    """
    N, H, W, C = h1.shape
    pad = dilation
    Hp, Wp = H + 2 * pad, W + 2 * pad
    Ho = (H + 2 * pad - 2 * dilation - 1) // stride + 1
    Wo = (W + 2 * pad - 2 * dilation - 1) // stride + 1
    K9 = w2r_bf16.shape[0]   # 9 * C
    # TODO(synk): for very large H*W*C (and better v7x megacore balance at small N), row-tile the
    # output (grid=(N, ceil(Ho/TH)) with a halo read) so the scratch shrinks to (TH*stride+2d, Wp, C).

    def kernel(h_ref, s_ref, b_ref, w_ref, o_ref, st_ref, pad_ref):
        bf16 = jnp.bfloat16
        a = jnp.maximum(
            h_ref[...].astype(jnp.float32) * s_ref[...] + b_ref[...], 0.0
        ).reshape(H, W, C).astype(bf16)

        # Halo strips are (re-)zeroed every step: the scratch is per-core and under megacore
        # "parallel" sharding program_id(0)==0 may never run on the second core, so gating the
        # zeroing on the first step would be unsafe.  Interior is overwritten each step.
        pad_ref[0:pad, :, :] = jnp.zeros((pad, Wp, C), bf16)
        pad_ref[pad + H:Hp, :, :] = jnp.zeros((pad, Wp, C), bf16)
        pad_ref[pad:pad + H, 0:pad, :] = jnp.zeros((H, pad, C), bf16)
        pad_ref[pad:pad + H, pad + W:Wp, :] = jnp.zeros((H, pad, C), bf16)
        pad_ref[pad:pad + H, pad:pad + W, :] = a

        # im2col: 9 shifted (strided for stride>1) windows, lane-concatenated -> one K=9*C matmul.
        wins = []
        for kh in range(3):
            for kw in range(3):
                if stride == 1:
                    wins.append(pad_ref[kh * dilation: kh * dilation + Ho,
                                        kw * dilation: kw * dilation + Wo, :])
                else:
                    wins.append(pad_ref[pl.ds(kh * dilation, Ho, stride=stride),
                                        pl.ds(kw * dilation, Wo, stride=stride), :])
        slab = jnp.concatenate(wins, axis=-1).reshape(Ho * Wo, K9)
        h = jnp.dot(slab, w_ref[...], preferred_element_type=jnp.float32)
        o_ref[...] = h.reshape(1, Ho, Wo, C).astype(bf16)
        st_ref[0, 0:1, :] = jnp.sum(h, axis=0, keepdims=True)
        st_ref[0, 1:2, :] = jnp.sum(h * h, axis=0, keepdims=True)

    vmem_need = (2 * _arr_bytes((H, W, C), 2)
                 + 2 * _arr_bytes((Ho, Wo, C), 2)
                 + 2 * _arr_bytes((8, C), 4)
                 + 2 * _arr_bytes((K9, C), 2)
                 + _arr_bytes((Hp, Wp, C), 2)        # bf16 padded scratch
                 + _arr_bytes((Ho * Wo, K9), 2)      # im2col slab temp
                 + _arr_bytes((H, W, C), 4)          # f32 BN temp
                 + _arr_bytes((Ho * Wo, C), 4)       # f32 conv accumulator
                 + 4 * _arr_bytes((1, C), 4))
    return pl.pallas_call(
        kernel,
        out_shape=(jax.ShapeDtypeStruct((N, Ho, Wo, C), jnp.bfloat16),
                   jax.ShapeDtypeStruct((N, 8, C), jnp.float32)),
        grid=(N,),
        in_specs=[pl.BlockSpec((1, H, W, C), lambda n: (n, 0, 0, 0)),
                  pl.BlockSpec((1, C), lambda n: (0, 0)),
                  pl.BlockSpec((1, C), lambda n: (0, 0)),
                  pl.BlockSpec((K9, C), lambda n: (0, 0))],
        out_specs=(pl.BlockSpec((1, Ho, Wo, C), lambda n: (n, 0, 0, 0)),
                   pl.BlockSpec((1, 8, C), lambda n: (n, 0, 0))),
        scratch_shapes=[pltpu.VMEM((Hp, Wp, C), jnp.bfloat16)],
        compiler_params=_mosaic_params(vmem_need),
    )(h1, scale, bias, w2r_bf16)


# ---------------------------------------------------------------------------
# module
# ---------------------------------------------------------------------------
class BottleneckPallas:
    """Pallas implementation of the pre-act Bottleneck block (NCHW in/out, like PyTorch)."""

    def __init__(self, inplanes, planes, stride=1, mode='NORM', k=1, dilation=1, *, key):
        self.inplanes, self.planes = inplanes, planes
        self.stride, self.mode, self.k, self.dilation = stride, mode, k, dilation
        self.btnk = planes // 4
        self.has_shortcut = (mode != 'UP') and (inplanes != planes or stride > 1)

        # lane-dense (multiple-of-128) channel dims used inside the kernels
        self.cin_p = _rup(inplanes, LANE)
        self.cmid_p = _rup(self.btnk, LANE)
        self.cout_p = _rup(planes, LANE)

        ks = jax.random.split(key, 12)
        f32 = jnp.float32

        def q(w):  # quantize weights to the bf16 grid (kernel uses bf16, reference uses f32)
            return w.astype(jnp.bfloat16).astype(f32)

        # conv weights stored transposed for channel-matmul:
        #   conv1.weight (O,I,1,1) -> (I,O); conv2.weight (O,I,3,3) -> HWIO; conv3 -> (I,O)
        self.w1 = q(0.1 * jax.random.normal(ks[0], (inplanes, self.btnk), f32))
        self.w2 = q(0.1 * jax.random.normal(ks[1], (3, 3, self.btnk, self.btnk), f32))
        self.w3 = q(0.1 * jax.random.normal(ks[2], (self.btnk, planes), f32))
        self.g1 = 1.0 + 0.1 * jax.random.normal(ks[3], (inplanes,), f32)
        self.b1 = 0.1 * jax.random.normal(ks[4], (inplanes,), f32)
        self.g2 = 1.0 + 0.1 * jax.random.normal(ks[5], (self.btnk,), f32)
        self.b2 = 0.1 * jax.random.normal(ks[6], (self.btnk,), f32)
        self.g3 = 1.0 + 0.1 * jax.random.normal(ks[7], (self.btnk,), f32)
        self.b3 = 0.1 * jax.random.normal(ks[8], (self.btnk,), f32)
        if self.has_shortcut:
            self.gs = 1.0 + 0.1 * jax.random.normal(ks[9], (inplanes,), f32)
            self.bs = 0.1 * jax.random.normal(ks[10], (inplanes,), f32)
            self.ws = q(0.1 * jax.random.normal(ks[11], (inplanes, planes), f32))

        # channel-padded bf16 copies of the weights / BN params for the kernels; zero padding
        # keeps the padded channels identically zero through the whole block.
        def padw(w, rp, cp):
            return jnp.pad(w, ((0, rp - w.shape[0]), (0, cp - w.shape[1]))).astype(jnp.bfloat16)

        def padv(v, cp):
            return jnp.pad(v, (0, cp - v.shape[0]))

        self.w1_k = padw(self.w1, self.cin_p, self.cmid_p)
        w2p = jnp.pad(self.w2, ((0, 0), (0, 0),
                                (0, self.cmid_p - self.btnk),
                                (0, self.cmid_p - self.btnk)))
        self.w2_k = w2p.reshape(9 * self.cmid_p, self.cmid_p).astype(jnp.bfloat16)
        self.w3_k = padw(self.w3, self.cmid_p, self.cout_p)
        self.g1_p, self.b1_p = padv(self.g1, self.cin_p), padv(self.b1, self.cin_p)
        self.g2_p, self.b2_p = padv(self.g2, self.cmid_p), padv(self.b2, self.cmid_p)
        self.g3_p, self.b3_p = padv(self.g3, self.cmid_p), padv(self.b3, self.cmid_p)
        if self.has_shortcut:
            self.ws_k = padw(self.ws, self.cin_p, self.cout_p)
            self.gs_p, self.bs_p = padv(self.gs, self.cin_p), padv(self.bs, self.cin_p)

    def __call__(self, x_nchw):
        N, Cin, H, W = x_nchw.shape
        assert Cin == self.inplanes
        s, d = self.stride, self.dilation
        pad = d
        Ho = (H + 2 * pad - 2 * d - 1) // s + 1
        Wo = (W + 2 * pad - 2 * d - 1) // s + 1
        M = N * H * W
        M2 = N * Ho * Wo
        bf16, f32 = jnp.bfloat16, jnp.float32

        # NCHW -> NHWC, bf16, channel-padded to a lane-dense multiple of 128 (one fused XLA pass)
        x = jnp.transpose(x_nchw, (0, 2, 3, 1)).astype(bf16)
        if self.cin_p != Cin:
            x = jnp.pad(x, ((0, 0), (0, 0), (0, 0), (0, self.cin_p - Cin)))
        x2d = x.reshape(M, self.cin_p)

        # bn1 (and shortcut-bn) statistics: one XLA pass over bf16 x, f32 accumulation
        xsum = jnp.sum(x2d, axis=0, dtype=f32)
        xsq = jnp.sum(jnp.square(x2d.astype(f32)), axis=0)
        s1, b1 = _fold(self.g1_p, self.b1_p, xsum, xsq, M)

        # ---- stage 1: fused BN+ReLU + 1x1 conv; emits partial sums for bn2 ----
        h1_2d, st1 = _linear_bn_relu_stats(x2d, s1, b1, self.w1_k)       # bf16 (M, CmidP)
        s2, b2 = _fold(self.g2_p, self.b2_p,
                       jnp.sum(st1[:, 0, :], axis=0), jnp.sum(st1[:, 1, :], axis=0), M)

        # ---- stage 2: fused BN+ReLU + 3x3 conv (im2col); emits partial sums for bn3 ----
        h2, st2 = _conv3x3_bn_relu_stats(h1_2d.reshape(N, H, W, self.cmid_p),
                                         s2, b2, self.w2_k, stride=s, dilation=d)
        s3, b3 = _fold(self.g3_p, self.b3_p,
                       jnp.sum(st2[:, 0, :], axis=0), jnp.sum(st2[:, 1, :], axis=0), M2)
        h2_2d = h2.reshape(M2, self.cmid_p)                               # bf16 (M2, CmidP)

        # ---- stage 3: fused BN+ReLU + 1x1 conv + residual ----
        if self.mode == 'UP':
            assert s == 1 and Cin // self.k == self.planes, \
                "UP mode requires stride==1 and inplanes//k == planes"
            res = x2d[:, :Cin].astype(f32).reshape(M, Cin // self.k, self.k).sum(axis=-1)
            res2d = jnp.pad(res, ((0, 0), (0, self.cout_p - Cin // self.k))).astype(bf16)
            out2d = _linear_bn_relu_add(h2_2d, res2d, s3, b3, self.w3_k)
        elif self.has_shortcut:
            # TODO(synk): for stride>1, read the strided rows in-kernel instead of this XLA slice
            xs = x[:, ::s, ::s, :] if s > 1 else x                        # bf16
            xs2d = xs.reshape(M2, self.cin_p)
            ss, bs = _fold(self.gs_p, self.bs_p, xsum, xsq, M)
            out2d = _linear_bn_relu_shortcut(h2_2d, xs2d, s3, b3, ss, bs,
                                             self.w3_k, self.ws_k)
        else:
            assert Cin == self.planes and s == 1
            out2d = _linear_bn_relu_add(h2_2d, x2d, s3, b3, self.w3_k)

        out = out2d.reshape(N, Ho, Wo, self.cout_p)[..., :self.planes]
        return jnp.transpose(out, (0, 3, 1, 2))                           # NHWC -> NCHW


# ---------------- pure-JAX (XLA) reference for validation ----------------
def _reference(mod: BottleneckPallas, x_nchw):
    def bn_relu(t, g, b):
        mean = t.mean(axis=(0, 2, 3), keepdims=True)
        var = ((t - mean) ** 2).mean(axis=(0, 2, 3), keepdims=True)
        y = (t - mean) / jnp.sqrt(var + EPS) * g.reshape(1, -1, 1, 1) + b.reshape(1, -1, 1, 1)
        return jnp.maximum(y, 0.0)

    def conv(t, w_oihw, stride=1, dilation=1, padding=0):
        return lax.conv_general_dilated(
            t, w_oihw, (stride, stride), [(padding, padding), (padding, padding)],
            rhs_dilation=(dilation, dilation),
            dimension_numbers=('NCHW', 'OIHW', 'NCHW'))

    w1 = mod.w1.T.reshape(mod.btnk, mod.inplanes, 1, 1)
    w2 = jnp.transpose(mod.w2, (3, 2, 0, 1))           # HWIO -> OIHW
    w3 = mod.w3.T.reshape(mod.planes, mod.btnk, 1, 1)

    h = conv(bn_relu(x_nchw, mod.g1, mod.b1), w1)
    h = conv(bn_relu(h, mod.g2, mod.b2), w2, stride=mod.stride,
             dilation=mod.dilation, padding=mod.dilation)
    out = conv(bn_relu(h, mod.g3, mod.b3), w3)

    if mod.mode == 'UP':
        n, c, hh, ww = x_nchw.shape
        res = x_nchw.reshape(n, c // mod.k, mod.k, hh, ww).sum(2)
    elif mod.has_shortcut:
        ws = mod.ws.T.reshape(mod.planes, mod.inplanes, 1, 1)
        res = conv(bn_relu(x_nchw, mod.gs, mod.bs), ws, stride=mod.stride)
    else:
        res = x_nchw
    return out + res


if __name__ == "__main__":
    key = jax.random.PRNGKey(0)
    kx, kp = jax.random.split(key)

    # small shapes: batch=2, inplanes=4, planes=16 (btnk_ch=4), spatial=16x16
    # inplanes != planes -> exercises the BN+ReLU+1x1-conv shortcut path.
    x = jax.random.normal(kx, (2, 4, 16, 16), jnp.float32)
    block = BottleneckPallas(inplanes=4, planes=16, stride=1, mode='NORM',
                             k=1, dilation=1, key=kp)

    out = jax.block_until_ready(block(x))
    ref = jax.block_until_ready(_reference(block, x))

    assert out.shape == (2, 16, 16, 16), out.shape
    assert bool(jnp.all(jnp.isfinite(out)))
    # intermediates travel through HBM in bf16 -> compare at bf16-level tolerance
    assert jnp.allclose(out, ref, rtol=5e-2, atol=5e-2), float(jnp.max(jnp.abs(out - ref)))

    print("KERNEL_OK")
</pallas_src>

<mosaic_0001>
module attributes {stable_mosaic.version = 11 : i64} {
  func.func @kernel(%arg0: i32, %arg1: memref<256x128xbf16, #tpu.memory_space<vmem>>, %arg2: memref<1x128xf32, #tpu.memory_space<vmem>>, %arg3: memref<1x128xf32, #tpu.memory_space<vmem>>, %arg4: memref<128x128xbf16, #tpu.memory_space<vmem>>, %arg5: memref<256x128xbf16, #tpu.memory_space<vmem>>, %arg6: memref<1x8x128xf32, #tpu.memory_space<vmem>>) attributes {dimension_semantics = [#tpu.dimension_semantics<parallel>], iteration_bounds = array<i64: 2>, scalar_prefetch = 0 : i64, scratch_operands = 0 : i64, tpu.core_type = #tpu.core_type<tc>, window_params = [{transform_indices = @transform_0, window_bounds = array<i64: 256, 128>}, {pipeline_mode = #tpu.pipeline_mode<synchronous>, transform_indices = @transform_1, window_bounds = array<i64: 1, 128>}, {pipeline_mode = #tpu.pipeline_mode<synchronous>, transform_indices = @transform_2, window_bounds = array<i64: 1, 128>}, {pipeline_mode = #tpu.pipeline_mode<synchronous>, transform_indices = @transform_3, window_bounds = array<i64: 128, 128>}, {transform_indices = @transform_4, window_bounds = array<i64: 256, 128>}, {transform_indices = @transform_5, window_bounds = array<i64: 1, 8, 128>}]} {
    %c0 = arith.constant 0 : index
    %c0_0 = arith.constant 0 : index
    %0 = vector.load %arg1[%c0, %c0_0] : memref<256x128xbf16, #tpu.memory_space<vmem>>, vector<256x128xbf16>
    %1 = arith.extf %0 : vector<256x128xbf16> to vector<256x128xf32>
    %c0_1 = arith.constant 0 : index
    %c0_2 = arith.constant 0 : index
    %2 = vector.load %arg2[%c0_1, %c0_2] : memref<1x128xf32, #tpu.memory_space<vmem>>, vector<1x128xf32>
    %3 = vector.broadcast %2 : vector<1x128xf32> to vector<256x128xf32>
    %4 = arith.mulf %1, %3 : vector<256x128xf32>
    %c0_3 = arith.constant 0 : index
    %c0_4 = arith.constant 0 : index
    %5 = vector.load %arg3[%c0_3, %c0_4] : memref<1x128xf32, #tpu.memory_space<vmem>>, vector<1x128xf32>
    %6 = vector.broadcast %5 : vector<1x128xf32> to vector<256x128xf32>
    %7 = arith.addf %4, %6 : vector<256x128xf32>
    %cst = arith.constant 0.000000e+00 : f32
    %8 = vector.broadcast %cst : f32 to vector<256x128xf32>
    %9 = arith.maximumf %7, %8 : vector<256x128xf32>
    %10 = arith.truncf %9 : vector<256x128xf32> to vector<256x128xbf16>
    %c0_5 = arith.constant 0 : index
    %c0_6 = arith.constant 0 : index
    %11 = vector.load %arg4[%c0_5, %c0_6] : memref<128x128xbf16, #tpu.memory_space<vmem>>, vector<128x128xbf16>
    %cst_7 = arith.constant dense<0.000000e+00> : vector<256x128xf32>
    %12 = tpu.matmul %10, %11, %cst_7 {dimension_numbers = #tpu.dot_dimension_numbers<[1], [0], [0], [1], [0, 0, 1, 1], [], []>} : vector<256x128xbf16>, vector<128x128xbf16>, vector<256x128xf32> -> vector<256x128xf32>
    %13 = arith.truncf %12 : vector<256x128xf32> to vector<256x128xbf16>
    %c0_8 = arith.constant 0 : index
    %c0_9 = arith.constant 0 : index
    %14 = vector.load %arg5[%c0_8, %c0_9] : memref<256x128xbf16, #tpu.memory_space<vmem>>, vector<256x128xbf16>
    tpu.vector_store %arg5[%c0_8, %c0_9], %13 {strides = array<i32>} : memref<256x128xbf16, #tpu.memory_space<vmem>>, vector<256x128xbf16>,
    %cst_10 = arith.constant dense<0.000000e+00> : vector<128xf32>
    %15 = vector.multi_reduction <add>, %12, %cst_10 [0] : vector<256x128xf32> to vector<128xf32>
    %16 = vector.shape_cast %15 : vector<128xf32> to vector<1x128xf32>
    %c0_11 = arith.constant 0 : index
    %c0_12 = arith.constant 0 : index
    %c0_13 = arith.constant 0 : index
    %17 = vector.load %arg6[%c0_11, %c0_12, %c0_13] : memref<1x8x128xf32, #tpu.memory_space<vmem>>, vector<1x1x128xf32>
    %18 = vector.shape_cast %17 : vector<1x1x128xf32> to vector<1x128xf32>
    %19 = vector.shape_cast %16 : vector<1x128xf32> to vector<1x1x128xf32>
    tpu.vector_store %arg6[%c0_11, %c0_12, %c0_13], %19 {strides = array<i32>} : memref<1x8x128xf32, #tpu.memory_space<vmem>>, vector<1x1x128xf32>,
    %20 = arith.mulf %12, %12 : vector<256x128xf32>
    %cst_14 = arith.constant dense<0.000000e+00> : vector<128xf32>
    %21 = vector.multi_reduction <add>, %20, %cst_14 [0] : vector<256x128xf32> to vector<128xf32>
    %22 = vector.shape_cast %21 : vector<128xf32> to vector<1x128xf32>
    %c0_15 = arith.constant 0 : index
    %c1 = arith.constant 1 : index
    %c0_16 = arith.constant 0 : index
    %23 = vector.load %arg6[%c0_15, %c1, %c0_16] : memref<1x8x128xf32, #tpu.memory_space<vmem>>, vector<1x1x128xf32>
    %24 = vector.shape_cast %23 : vector<1x1x128xf32> to vector<1x128xf32>
    %25 = vector.shape_cast %22 : vector<1x128xf32> to vector<1x1x128xf32>
    tpu.vector_store %arg6[%c0_15, %c1, %c0_16], %25 {strides = array<i32>} : memref<1x8x128xf32, #tpu.memory_space<vmem>>, vector<1x1x128xf32>,
    return
  }
  func.func @transform_0(%arg0: i32) -> (i32, i32) {
    %c0_i32 = arith.constant 0 : i32
    %c0_i32_0 = arith.constant 0 : i32
    return %arg0, %c0_i32 : i32, i32
  }
  func.func @transform_1(%arg0: i32) -> (i32, i32) {
    %c0_i32 = arith.constant 0 : i32
    %c0_i32_0 = arith.constant 0 : i32
    %c0_i32_1 = arith.constant 0 : i32
    return %c0_i32, %c0_i32_0 : i32, i32
  }
  func.func @transform_2(%arg0: i32) -> (i32, i32) {
    %c0_i32 = arith.constant 0 : i32
    %c0_i32_0 = arith.constant 0 : i32
    %c0_i32_1 = arith.constant 0 : i32
    return %c0_i32, %c0_i32_0 : i32, i32
  }
  func.func @transform_3(%arg0: i32) -> (i32, i32) {
    %c0_i32 = arith.constant 0 : i32
    %c0_i32_0 = arith.constant 0 : i32
    %c0_i32_1 = arith.constant 0 : i32
    return %c0_i32, %c0_i32_0 : i32, i32
  }
  func.func @transform_4(%arg0: i32) -> (i32, i32) {
    %c0_i32 = arith.constant 0 : i32
    %c0_i32_0 = arith.constant 0 : i32
    return %arg0, %c0_i32 : i32, i32
  }
  func.func @transform_5(%arg0: i32) -> (i32, i32, i32) {
    %c0_i32 = arith.constant 0 : i32
    %c0_i32_0 = arith.constant 0 : i32
    %c0_i32_1 = arith.constant 0 : i32
    return %arg0, %c0_i32, %c0_i32_0 : i32, i32, i32
  }
}

</mosaic_0001>

<bundles_post_ra>
// kernel: tpu_custom_call.1
= control target key start
LH: loop header
LB: loop body
LE: loop exit
PB: predicated region body
PF: predicated region fallthrough
CT: control target
= control target key end

     0   :  { %s1939_s0 = inlined_call_operand.hbm [shape: bf16[512,128], index: 0, kind: input, shape index: {}]   ;;  %s1940_s1 = inlined_call_operand.hbm [shape: f32[1,128], index: 1, kind: input, shape index: {}]   ;;  %s1941_s2 = inlined_call_operand.vmem [shape: f32[1,128], index: 2, kind: input, shape index: {}]   ;;  %s1942_s3 = inlined_call_operand.hbm [shape: bf16[128,128], index: 3, kind: input, shape index: {}]   ;;  %s1943_s4 = inlined_call_operand.hbm [shape: bf16[512,128], index: 4, kind: output, shape index: {0}]   ;;  %s1944_s5 = inlined_call_operand.hbm [shape: f32[2,8,128], index: 5, kind: output, shape index: {1}]  }
   0x1   :  { %1946 = sst [smem:[#allocation17_spill]] %s1940_s1 }
   0x2   :  { %1947 = sst [smem:[#allocation18_spill]] %s1942_s3 }
   0x3   :  { %11 = vsyncpa [#allocation3], 0 }
   0x4   :  { %13 = vsyncpa [#allocation3 + $0x1], 0 }
   0x5   :  { %14 = vsyncpa [#allocation6], 0 }
   0x6   :  { %15 = vsyncpa [#allocation4], 0 }
   0x7   :  { %17 = vsyncpa [#allocation4 + $0x1], 0 }
   0x8   :  { %18 = vsyncpa [#allocation10], 0 }
   0x9   :  { %20 = vsyncpa [#allocation10 + $0x1], 0  ;;  %s1527_s18 = smov 0   ;;  %s1529_s19 = smov 0  }
   0xa   :  { %s1531_s20 = smov 0   ;;  %s1533_s21 = smov 0  }
   0xb LB: > { %1948 = sst [smem:[#allocation15_spill]] %s1485_s20  ;;  %s1548_s22 = sadd.s32 4294967295, %s1489_s21   ;;  %s1489_s21 = sphi %s1533_s21, %s1963_s21   ;;  %s1485_s20 = sphi %s1531_s20, %s1960_s20   ;;  %s1481_s19 = sphi %s1529_s19, %s1962_s19   ;;  %s1477_s18 = sphi %s1527_s18, %s1961_s18  }
   0xc   : > { %s958_s23 = sadd.s32 4294967294, %s1489_s21   ;;  %s1552_s24 = sadd.s32 1, %s1489_s21  }
   0xd   : > { %s33_s25 = sadd.s32 1, %s1485_s20  ;;  %s30_s26 = ssub.s32 %s1489_s21, %s1552_s24 }
   0xe   : > { %p40_p0 = scmp.ne.s32.totalorder %s1485_s20, %s1481_s19  ;;  %p31_p1 = scmp.eq.s32.totalorder %s30_s26, 0 }
   0xf   : > { %p41_p2 = scmp.eq.s32.totalorder %s1489_s21, 0  ;;  %p46_p3 = scmp.ne.s32.totalorder %s1481_s19, %s1477_s18 }
  0x10   : > { %p47_p4 = scmp.eq.s32.totalorder %s1548_s22, 0  ;;  %p133_p7 = scmp.eq.s32.totalorder %s1548_s22, 1 }
  0x11   : > { %s1564_s27 = scalar_select %p31_p1, %s1485_s20, %s33_s25  }
  0x12   : > { %p1566_p5 = por %p41_p2, %p40_p0  ;;  %p1572_p6 = por %p47_p4, %p46_p3 }
  0x13   : > { %1949 = sst [smem:[#allocation16_spill]] %s1564_s27  ;;  %p139_p8 = scmp.eq.s32.totalorder %s958_s23, 1 }
  0x14   : > { %p959_p9 = scmp.ge.s32.totalorder %s1489_s21, 1  ;;  %p172_p10 = scmp.lt.s32.totalorder %s1489_s21, 3 }
  0x15   : > { %p1579_p11 = por %p133_p7, %p40_p0  ;;  %p1583_p12 = por %p139_p8, %p46_p3 }
  0x16   : > { %p1587_p13 = pnand %p959_p9, %p172_p10  ;;  %s1955_s1 = sld [smem:[#allocation17_spill]] }
  0x17   : > { %s1491_s11 = smov [#allocation5]   ;;  %p1253_p3 = scmp.lt.s32.totalorder %s1489_s21, 2 }
  0x18   : > { %p1233_p1 = pneg %p1587_p13  ;;  %s186_s12 = sshll.u32 %s1491_s11, 4  ;;  %s187_s12 = int_to_ptr.vmem [resolvable:$true] %s186_s12 }
  0x19   : > { %s1956_s3 = sld [smem:[#allocation18_spill]]  ;;  %p1605_p7 = pnand %p1253_p3, %p1566_p5 }
  0x1a   : > { %p1234_p2 = pnand %p1233_p1, %p47_p4  ;;  %s1492_s17 = smov [#allocation7]  }
  0x1b   : > { %s200_s23 = sshll.u32 %s1492_s17, 4  ;;  %s214_s25 = sand.u32 1, %s1485_s20   ;;  %s201_s23 = int_to_ptr.vmem [resolvable:$true] %s200_s23 }
  0x1c   : > { %s184_s10 = sshll.u32 %s1955_s1, 4  ;;  %s1493_s26 = smov 64   ;;  %s185_s10 = int_to_ptr.hbm [resolvable:$true] %s184_s10 }
  0x1d   : > { %1236 = dma.hbm_to_vmem [thread:$0]  (!%p1234_p2), %s185_s10, 16, %s187_s12, [#allocation6]  }
  0x1e   : > { %s1494_s8 = smov 4   ;;  %s963_s9 = sshll.u32 %s214_s25, 7 }
  0x1f   : > { %s198_s15 = sshll.u32 %s1956_s3, 4  ;;  %s1011_s11 = sshll.u32 %s1489_s21, 7  ;;  %s199_s15 = int_to_ptr.hbm [resolvable:$true] %s198_s15 }
  0x20   : > { %1239 = dma.hbm_to_vmem [thread:$0]  (!%p1234_p2), %s199_s15, 1024, %s201_s23, [#allocation6], %s1493_s26, %s1493_s26, %s1494_s8  }
  0x21   : > { %s223_s14 = scalar_lea.hbm %s1939_s0, %s1011_s11  ;;  %s218_s10 = scalar_lea.vmem [#allocation2], %s963_s9 }
  0x22   : > { %s226_s28 = sshll.u32 %s218_s10, 4  ;;  %s224_s12 = sshll.u32 %s223_s14, 4  ;;  %s227_s28 = int_to_ptr.vmem [resolvable:$true] %s226_s28  ;;  %s225_s12 = int_to_ptr.hbm [resolvable:$true] %s224_s12 }
  0x23   : > { %s215_s3 = scalar_lea.sflag [#allocation3], %s214_s25  ;;  %s1357_s27 = sshra.s32 %s225_s12, 4  ;;  %s1358_s27 = int_to_ptr.hbm [resolvable:$true] %s1357_s27 }
  0x24   : > { %s1359_s17 = scalar_lea.hbm %s1358_s27, 128  ;;  %p1361_p8 = pneg %p1605_p7 }
  0x25   : > { %p1360_p5 = scmp.ne.s32.totalorder %s1358_s27, %s1359_s17  ;;  %s1364_s20 = scalar_lea.hbm %s1939_s0, 256 }
  0x26   : > { %p1365_p1 = scmp.lt.s32.totalorder %s1358_s27, %s1939_s0  ;;  %p1366_p2 = scmp.lt.s32.totalorder %s1364_s20, %s1359_s17 }
  0x27   : > { %p1362_p9 = pnand %p1361_p8, %p1360_p5 }
  0x28   : > { %p1367_p3 = por %p1366_p2, %p1365_p1 }
  0x29   : > { %p1363_p10 = pneg %p1362_p9 }
  0x2b   : > { %p1368_p0 = pnand %p1367_p3, %p1363_p10 }
  0x2d   : > { %1371 = shalt.err (!%p1368_p0)
}
  0x2e   : > { %1243 = dma.hbm_to_vmem [thread:$0]  (!%p1605_p7), %s225_s12, 2048, %s227_s28, %s215_s3, %s1493_s26, %s1493_s26, %s1494_s8  }
  0x2f   : > { %238 = sbr.rel (%p1587_p13) target bundleno = 336 (0x150), region = 36  ;;  %s1627_s25 = sand.u32 (!%p1587_p13), 1, %s1481_s19  }
  0x30   : > { %s967_s9 = sshll.u32 (!%p1587_p13), %s1627_s25, 7  ;;  %s241_s13 = scalar_lea.sflag (!%p1587_p13), [#allocation3], %s1627_s25 }
  0x31   : > { %s1633_s20 = scalar_lea.vmem (!%p1587_p13), [#allocation2], %s967_s9 }
  0x34   : > { %1460 = dma.done.wait (%p1572_p6), %s241_s13, 2048  }
  0x35   : > { %1462 = vsyncadd (%p1572_p6), %s241_s13, 4294965248 }
  0x36   : > { %1464 = dma.done.wait (%p47_p4), [#allocation6], 1040  }
  0x37   : > { %1466 = vsyncadd (%p47_p4), [#allocation6], 4294966256  ;;  %v1019_v0 = vld [vmem:[#allocation7 + $0x38] sm:$0xff]  ;;  %v1018_v1 = vld [vmem:[#allocation7 + $0x30] sm:$0xff]  ;;  %s1742_s29 = scalar_lea.vmem [#allocation8], %s967_s9  ;;  %s1020_s7 = sshll.u32 %s1548_s22, 7 }
  0x38   : > { %537 = vmatpush.bf16.msra.mxu0 %v1019_v0  ;;  %1195 = vmatpush.bf16.msra.mxu1 %v1019_v0  ;;  %v1017_v2 = vld [vmem:[#allocation7 + $0x28] sm:$0xff]  ;;  %v1022_v3 = vld [vmem:[%s1633_s20] sm:$0xff]   ;;  %v1014_v20 = vld [vmem:[#allocation7 + $0x10] sm:$0xff]  ;;  %s815_s8 = scalar_lea.hbm %s1943_s4, %s1020_s7  ;;  %s816_s14 = sshll.u32 %s1742_s29, 4  ;;  %s1829_s14 = int_to_ptr.vmem [resolvable:$true] %s816_s14 }
  0x39   : > { %1196 = vmatpush.bf16.msra.mxu2 %v1019_v0  ;;  %1197 = vmatpush.bf16.msra.mxu3 %v1019_v0  ;;  %v1016_v4 = vld [vmem:[#allocation7 + $0x20] sm:$0xff]  ;;  %v1023_v7 = vunpack.c.l.bf16 %v1022_v3  ;;  %v1024_v8 = vunpack.c.h.bf16 %v1022_v3  ;;  %v1646_v9 = vld [vmem:[#allocation5] ss:$0 sm:$0xff]  ;;  %v1013_v27 = vld [vmem:[#allocation7 + $0x8] sm:$0xff]  ;;  %s818_s10 = sshll.u32 %s815_s8, 4  ;;  %s799_s28 = scalar_lea.sflag [#allocation4], %s1627_s25  ;;  %s1831_s10 = int_to_ptr.hbm [resolvable:$true] %s818_s10 }
  0x3a   : > { %v1168_v5 = vld [vmem:[%s1633_s20 + $0x20] sm:$0xff]   ;;  %v1165_v32 = vld [vmem:[%s1633_s20 + $0x8] sm:$0xff]   ;;  %s1401_s12 = sshra.s32 %s1831_s10, 4  ;;  %s1407_s1 = scalar_lea.hbm %s1943_s4, 256  ;;  %s1402_s12 = int_to_ptr.hbm [resolvable:$true] %s1401_s12 }
  0x3b   : > { %v1172_v6 = vld [vmem:[%s1633_s20 + $0x40] sm:$0xff]   ;;  %v1039_v10 = vunpack.c.l.bf16 %v1168_v5  ;;  %v1040_v11 = vunpack.c.h.bf16 %v1168_v5  ;;  %v357_v15 = vmul.f32 %v1646_v9, %v1023_v7  ;;  %v358_v16 = vmul.f32 %v1646_v9, %v1024_v8  ;;  %v1169_v36 = vld [vmem:[%s1633_s20 + $0x28] sm:$0xff]   ;;  %s1403_s17 = scalar_lea.hbm %s1402_s12, 128  ;;  %p1408_p0 = scmp.lt.s32.totalorder %s1402_s12, %s1943_s4 }
  0x3c   : > { %538 = vmatpush.bf16.msra.mxu0 %v1018_v1  ;;  %1198 = vmatpush.bf16.msra.mxu1 %v1018_v1  ;;  %v1015_v12 = vld [vmem:[#allocation7 + $0x18] sm:$0xff]  ;;  %v1055_v13 = vunpack.c.l.bf16 %v1172_v6  ;;  %v1056_v14 = vunpack.c.h.bf16 %v1172_v6  ;;  %v1012_v39 = vld [vmem:[#allocation7] sm:$0xff]  ;;  %v1027_v42 = vunpack.c.l.bf16 %v1165_v32  ;;  %v1028_v45 = vunpack.c.h.bf16 %v1165_v32  ;;  %p1404_p4 = scmp.ne.s32.totalorder %s1402_s12, %s1403_s17  ;;  %p1409_p7 = scmp.lt.s32.totalorder %s1407_s1, %s1403_s17 }
  0x3d   : > { %1199 = vmatpush.bf16.msra.mxu2 %v1018_v1  ;;  %1200 = vmatpush.bf16.msra.mxu3 %v1018_v1  ;;  %v1653_v17 = vld [vmem:[%s1941_s2] ss:$0 sm:$0xff]  ;;  %v365_v18 = vmul.f32 %v1646_v9, %v1039_v10  ;;  %v366_v19 = vmul.f32 %v1646_v9, %v1040_v11  ;;  %v1173_v43 = vld [vmem:[%s1633_s20 + $0x48] sm:$0xff]   ;;  %v1043_v46 = vunpack.c.l.bf16 %v1169_v36  ;;  %v1044_v47 = vunpack.c.h.bf16 %v1169_v36 }
  0x3e   : > { %v373_v21 = vmul.f32 %v1646_v9, %v1055_v13  ;;  %v374_v22 = vmul.f32 %v1646_v9, %v1056_v14  ;;  %v393_v23 = vadd.f32 %v1653_v17, %v357_v15  ;;  %v394_v24 = vadd.f32 %v1653_v17, %v358_v16  ;;  %v1176_v33 = vld [vmem:[%s1633_s20 + $0x60] sm:$0xff]   ;;  %v1166_v13 = vld [vmem:[%s1633_s20 + $0x10] sm:$0xff]   ;;  %p1405_p6 = pnand %p1404_p4, %p1579_p11  ;;  %p1410_p5 = por %p1409_p7, %p1408_p0 }
  0x3f   : > { %v401_v25 = vadd.f32 %v1653_v17, %v365_v18  ;;  %v402_v26 = vadd.f32 %v1653_v17, %v366_v19  ;;  %v1071_v37 = vunpack.c.l.bf16 %v1176_v33  ;;  %v1072_v38 = vunpack.c.h.bf16 %v1176_v33  ;;  %v1170_v19 = vld [vmem:[%s1633_s20 + $0x30] sm:$0xff]  }
  0x40   : > { %539 = vmatpush.bf16.msra.mxu0 %v1017_v2  ;;  %1201 = vmatpush.bf16.msra.mxu1 %v1017_v2  ;;  %v409_v28 = vadd.f32 %v1653_v17, %v373_v21  ;;  %v410_v29 = vadd.f32 %v1653_v17, %v374_v22  ;;  %v425_v30 = vmax.f32 %v393_v23, 0.0  ;;  %v426_v31 = vmax.f32 %v394_v24, 0.0  ;;  %p1406_p13 = pneg %p1405_p6 }
  0x41   : > { %1202 = vmatpush.bf16.msra.mxu2 %v1017_v2  ;;  %1203 = vmatpush.bf16.msra.mxu3 %v1017_v2  ;;  %v433_v34 = vmax.f32 %v401_v25, 0.0  ;;  %v434_v35 = vmax.f32 %v402_v26, 0.0  ;;  %v381_v44 = vmul.f32 %v1646_v9, %v1071_v37  ;;  %v382_v48 = vmul.f32 %v1646_v9, %v1072_v38 }
  0x42   : > { %v441_v40 = vmax.f32 %v409_v28, 0.0  ;;  %v442_v41 = vmax.f32 %v410_v29, 0.0  ;;  %v457_v49 = vpack.c.bf16 %v426_v31, %v425_v30  ;;  %v1059_v53 = vunpack.c.l.bf16 %v1173_v43  ;;  %p1411_p8 = pnand %p1410_p5, %p1406_p13 }
  0x43   : > { %v461_v50 = vpack.c.bf16 %v434_v35, %v433_v34  ;;  %v417_v51 = vadd.f32 %v1653_v17, %v381_v44  ;;  %v1060_v54 = vunpack.c.h.bf16 %v1173_v43  ;;  %v418_v55 = vadd.f32 %v1653_v17, %v382_v48  ;;  %v1178_v43 = vld [vmem:[%s1633_s20 + $0x70] sm:$0xff]  }
  0x44   : > { %540 = vmatpush.bf16.msra.mxu0 %v1016_v4  ;;  %1204 = vmatpush.bf16.msra.mxu1 %v1016_v4  ;;  %v465_v52 = vpack.c.bf16 %v442_v41, %v441_v40  ;;  %v359_v56 = vmul.f32 %v1646_v9, %v1027_v42  ;;  %v360_v58 = vmul.f32 %v1646_v9, %v1028_v45  ;;  %v1031_v25 = vunpack.c.l.bf16 %v1166_v13 }
  0x45   : > { %1205 = vmatpush.bf16.msra.mxu2 %v1016_v4  ;;  %1206 = vmatpush.bf16.msra.mxu3 %v1016_v4  ;;  %v449_v57 = vmax.f32 %v417_v51, 0.0  ;;  %v367_v59 = vmul.f32 %v1646_v9, %v1043_v46  ;;  %v368_v60 = vmul.f32 %v1646_v9, %v1044_v47  ;;  %v450_v61 = vmax.f32 %v418_v55, 0.0 }
  0x46   : > { %v375_v62 = vmul.f32 %v1646_v9, %v1059_v53  ;;  %v376_v63 = vmul.f32 %v1646_v9, %v1060_v54  ;;  %v395_v1 = vadd.f32 %v1653_v17, %v359_v56  ;;  %v396_v2 = vadd.f32 %v1653_v17, %v360_v58 }
  0x47   : > { %v469_v0 = vpack.c.bf16 %v450_v61, %v449_v57  ;;  %v403_v3 = vadd.f32 %v1653_v17, %v367_v59  ;;  %v404_v4 = vadd.f32 %v1653_v17, %v368_v60  ;;  %v1032_v26 = vunpack.c.h.bf16 %v1166_v13  ;;  %v1167_v60 = vld [vmem:[%s1633_s20 + $0x18] sm:$0xff]  }
  0x48   : > { %541 = vmatpush.bf16.msra.mxu0 %v1015_v12  ;;  %1207 = vmatpush.bf16.msra.mxu1 %v1015_v12  ;;  %v411_v5 = vadd.f32 %v1653_v17, %v375_v62  ;;  %v412_v6 = vadd.f32 %v1653_v17, %v376_v63  ;;  %v427_v7 = vmax.f32 %v395_v1, 0.0  ;;  %v428_v8 = vmax.f32 %v396_v2, 0.0  ;;  %v1171_v63 = vld [vmem:[%s1633_s20 + $0x38] sm:$0xff]  }
  0x49   : > { %1208 = vmatpush.bf16.msra.mxu2 %v1015_v12  ;;  %1209 = vmatpush.bf16.msra.mxu3 %v1015_v12  ;;  %v435_v10 = vmax.f32 %v403_v3, 0.0  ;;  %v436_v11 = vmax.f32 %v404_v4, 0.0  ;;  %v1177_v12 = vld [vmem:[%s1633_s20 + $0x68] sm:$0xff]   ;;  %v1048_v28 = vunpack.c.h.bf16 %v1170_v19  ;;  %v361_v36 = vmul.f32 %v1646_v9, %v1031_v25 }
  0x4a   : > { %v1075_v14 = vunpack.c.l.bf16 %v1177_v12  ;;  %v1076_v15 = vunpack.c.h.bf16 %v1177_v12  ;;  %v443_v16 = vmax.f32 %v411_v5, 0.0  ;;  %v444_v18 = vmax.f32 %v412_v6, 0.0 }
  0x4b   : > { %v458_v23 = vpack.c.bf16 %v428_v8, %v427_v7  ;;  %v462_v24 = vpack.c.bf16 %v436_v11, %v435_v10  ;;  %v362_v37 = vmul.f32 %v1646_v9, %v1032_v26  ;;  %v1079_v44 = vunpack.c.l.bf16 %v1178_v43  ;;  %v1179_v10 = vld [vmem:[%s1633_s20 + $0x78] sm:$0xff]  }
  0x4c   : > { %542 = vmatpush.bf16.msra.mxu0 %v1014_v20  ;;  %1210 = vmatpush.bf16.msra.mxu1 %v1014_v20  ;;  %v383_v21 = vmul.f32 %v1646_v9, %v1075_v14  ;;  %v384_v22 = vmul.f32 %v1646_v9, %v1076_v15  ;;  %v466_v31 = vpack.c.bf16 %v444_v18, %v443_v16  ;;  %v1080_v45 = vunpack.c.h.bf16 %v1178_v43 }
  0x4d   : > { %1211 = vmatpush.bf16.msra.mxu2 %v1014_v20  ;;  %1212 = vmatpush.bf16.msra.mxu3 %v1014_v20  ;;  %v1174_v20 = vld [vmem:[%s1633_s20 + $0x50] sm:$0xff]   ;;  %v397_v46 = vadd.f32 %v1653_v17, %v361_v36  ;;  %v398_v47 = vadd.f32 %v1653_v17, %v362_v37  ;;  %v1035_v2 = vunpack.c.l.bf16 %v1167_v60  ;;  %v1036_v6 = vunpack.c.h.bf16 %v1167_v60 }
  0x4e   : > { %v419_v29 = vadd.f32 %v1653_v17, %v383_v21  ;;  %v420_v30 = vadd.f32 %v1653_v17, %v384_v22  ;;  %v1063_v32 = vunpack.c.l.bf16 %v1174_v20  ;;  %v1064_v33 = vunpack.c.h.bf16 %v1174_v20 }
  0x4f   : > { %v386_v51 = vmul.f32 %v1646_v9, %v1080_v45  ;;  %v429_v54 = vmax.f32 %v397_v46, 0.0  ;;  %v430_v55 = vmax.f32 %v398_v47, 0.0  ;;  %v1051_v7 = vunpack.c.l.bf16 %v1171_v63 }
  0x50   : > { %543 = vmatpush.bf16.msra.mxu0 %v1013_v27  ;;  %1213 = vmatpush.bf16.msra.mxu1 %v1013_v27  ;;  %v451_v34 = vmax.f32 %v419_v29, 0.0  ;;  %v452_v35 = vmax.f32 %v420_v30, 0.0  ;;  %v377_v41 = vmul.f32 %v1646_v9, %v1063_v32  ;;  %v378_v42 = vmul.f32 %v1646_v9, %v1064_v33 }
  0x51   : > { %1214 = vmatpush.bf16.msra.mxu2 %v1013_v27  ;;  %1215 = vmatpush.bf16.msra.mxu3 %v1013_v27  ;;  %v1047_v27 = vunpack.c.l.bf16 %v1170_v19  ;;  %v422_v57 = vadd.f32 %v1653_v17, %v386_v51  ;;  %v459_v1 = vpack.c.bf16 %v430_v55, %v429_v54  ;;  %v1052_v8 = vunpack.c.h.bf16 %v1171_v63 }
  0x52   : > { %v470_v40 = vpack.c.bf16 %v452_v35, %v451_v34  ;;  %v414_v53 = vadd.f32 %v1653_v17, %v378_v42  ;;  %v363_v14 = vmul.f32 %v1646_v9, %v1035_v2  ;;  %v1083_v16 = vunpack.c.l.bf16 %v1179_v10 }
  0x53   : > { %v369_v38 = vmul.f32 %v1646_v9, %v1047_v27  ;;  %v454_v4 = vmax.f32 %v422_v57, 0.0  ;;  %v1084_v18 = vunpack.c.h.bf16 %v1179_v10  ;;  %v364_v19 = vmul.f32 %v1646_v9, %v1036_v6 }
  0x54   : > { %544 = vmatpush.bf16.msra.mxu0 %v1012_v39  ;;  %1216 = vmatpush.bf16.msra.mxu1 %v1012_v39  ;;  %v446_v62 = vmax.f32 %v414_v53, 0.0  ;;  %v371_v20 = vmul.f32 %v1646_v9, %v1051_v7  ;;  %v372_v21 = vmul.f32 %v1646_v9, %v1052_v8  ;;  %v399_v26 = vadd.f32 %v1653_v17, %v363_v14 }
  0x55   : > { %1217 = vmatpush.bf16.msra.mxu2 %v1012_v39  ;;  %1218 = vmatpush.bf16.msra.mxu3 %v1012_v39  ;;  %v370_v39 = vmul.f32 %v1646_v9, %v1048_v28  ;;  %v405_v48 = vadd.f32 %v1653_v17, %v369_v38  ;;  %v388_v25 = vmul.f32 %v1646_v9, %v1084_v18 }
  0x56   : > { %v400_v27 = vadd.f32 %v1653_v17, %v364_v19  ;;  %v407_v28 = vadd.f32 %v1653_v17, %v371_v20  ;;  %v408_v29 = vadd.f32 %v1653_v17, %v372_v21  ;;  %v431_v34 = vmax.f32 %v399_v26, 0.0 }
  0x57   : > { %545 = vmatmul.bf16.vlgmr.msra.gmra.mxu0 %v457_v49  ;;  %565 = vmatmul.bf16.vlgmr.msra.gmra.mxu1 %v461_v50  ;;  %v406_v49 = vadd.f32 %v1653_v17, %v370_v39  ;;  %v385_v50 = vmul.f32 %v1646_v9, %v1079_v44  ;;  %v437_v58 = vmax.f32 %v405_v48, 0.0  ;;  %v424_v33 = vadd.f32 %v1653_v17, %v388_v25 }
  0x58   : > { %585 = vmatmul.bf16.vlgmr.msra.gmra.mxu2 %v465_v52  ;;  %605 = vmatmul.bf16.vlgmr.msra.gmra.mxu3 %v469_v0  ;;  %v413_v52 = vadd.f32 %v1653_v17, %v377_v41  ;;  %v1175_v0 = vld [vmem:[%s1633_s20 + $0x58] sm:$0xff]   ;;  %v432_v35 = vmax.f32 %v400_v27, 0.0  ;;  %v439_v36 = vmax.f32 %v407_v28, 0.0 }
  0x59   : > { %v421_v56 = vadd.f32 %v1653_v17, %v385_v50  ;;  %v438_v59 = vmax.f32 %v406_v49, 0.0  ;;  %v1067_v12 = vunpack.c.l.bf16 %v1175_v0  ;;  %v1068_v13 = vunpack.c.h.bf16 %v1175_v0 }
  0x5a   : > { %v445_v61 = vmax.f32 %v413_v52, 0.0  ;;  %v460_v41 = vpack.c.bf16 %v432_v35, %v431_v34 }
  0x5b   : > { %v453_v3 = vmax.f32 %v421_v56, 0.0  ;;  %v463_v5 = vpack.c.bf16 %v438_v59, %v437_v58  ;;  %v379_v22 = vmul.f32 %v1646_v9, %v1067_v12 }
  0x5c   : > { %v467_v11 = vpack.c.bf16 %v446_v62, %v445_v61 }
  0x5d   : > { %v471_v15 = vpack.c.bf16 %v454_v4, %v453_v3  ;;  %v415_v30 = vadd.f32 %v1653_v17, %v379_v22 }
  0x5f   : > { %v447_v37 = vmax.f32 %v415_v30, 0.0 }
  0x67   : > { %550 = vmatmul.bf16.gmra.mxu0 %v458_v23  ;;  %570 = vmatmul.bf16.gmra.mxu1 %v462_v24  ;;  %v380_v23 = vmul.f32 %v1646_v9, %v1068_v13  ;;  %v387_v24 = vmul.f32 %v1646_v9, %v1083_v16  ;;  %v440_v9 = vmax.f32 %v408_v29, 0.0 }
  0x68   : > { %590 = vmatmul.bf16.gmra.mxu2 %v466_v31  ;;  %610 = vmatmul.bf16.gmra.mxu3 %v470_v40  ;;  %v456_v40 = vmax.f32 %v424_v33, 0.0 }
  0x69   : > { %v416_v31 = vadd.f32 %v1653_v17, %v380_v23  ;;  %v423_v32 = vadd.f32 %v1653_v17, %v387_v24  ;;  %v464_v42 = vpack.c.bf16 %v440_v9, %v439_v36 }
  0x6b   : > { %v448_v38 = vmax.f32 %v416_v31, 0.0  ;;  %v455_v39 = vmax.f32 %v423_v32, 0.0 }
  0x6d   : > { %v468_v43 = vpack.c.bf16 %v448_v38, %v447_v37  ;;  %v472_v44 = vpack.c.bf16 %v456_v40, %v455_v39 }
  0x77   : > { %555 = vmatmul.bf16.gmra.mxu0 %v459_v1  ;;  %575 = vmatmul.bf16.gmra.mxu1 %v463_v5 }
  0x78   : > { %595 = vmatmul.bf16.gmra.mxu2 %v467_v11  ;;  %615 = vmatmul.bf16.gmra.mxu3 %v471_v15 }
  0x87   : > { %560 = vmatmul.bf16.gmra.mxu0 %v460_v41  ;;  %580 = vmatmul.bf16.gmra.mxu1 %v464_v42 }
  0x88   : > { %600 = vmatmul.bf16.gmra.mxu2 %v468_v43  ;;  %620 = vmatmul.bf16.gmra.mxu3 %v472_v44 }
  0xd4   : > { %v546_v45 = vpop.f32.mrf.mxu0  ;;  %v1730_v46 = vpop.f32.mrf.mxu1 }
  0xd5   : > { %v728_v14 = vmul.f32 %v546_v45, %v546_v45 }
  0xdb   : > { %v1732_v17 = vpop.f32.mrf.mxu2  ;;  %v1738_v51 = vpop.f32.mrf.mxu3 }
  0xdc   : > { %v548_v47 = vpop.f32.mrf.mxu0  ;;  %v1734_v48 = vpop.f32.mrf.mxu1 }
  0xdd   : > { %v1088_v49 = vpack.c.bf16 %v548_v47, %v546_v45  ;;  %v1108_v50 = vpack.c.bf16 %v1734_v48, %v1730_v46  ;;  %v729_v13 = vmul.f32 %v548_v47, %v548_v47  ;;  %v690_v16 = vadd.f32 %v548_v47, %v546_v45 }
  0xde   : > { %v736_v47 = vmul.f32 %v1730_v46, %v1730_v46 }
  0xdf   : > { %1089 = vst [vmem:[%s1742_s29] sm:$0xff] %v1088_v49   ;;  %v760_v18 = vadd.f32 %v729_v13, %v728_v14 }
  0xe0   : > { %1183 = vst [vmem:[%s1742_s29 + $0x20] sm:$0xff] %v1108_v50  }
  0xe3   : > { %v1746_v52 = vpop.f32.mrf.mxu2  ;;  %v1752_v56 = vpop.f32.mrf.mxu3 }
  0xe4   : > { %v551_v53 = vpop.f32.mrf.mxu0  ;;  %v1748_v54 = vpop.f32.mrf.mxu1  ;;  %v1128_v55 = vpack.c.bf16 %v1746_v52, %v1732_v17  ;;  %v1148_v57 = vpack.c.bf16 %v1752_v56, %v1738_v51 }
  0xe5   : > { %v730_v15 = vmul.f32 %v551_v53, %v551_v53  ;;  %v691_v20 = vadd.f32 %v690_v16, %v551_v53 }
  0xe6   : > { %1187 = vst [vmem:[%s1742_s29 + $0x40] sm:$0xff] %v1128_v55  }
  0xe7   : > { %1191 = vst [vmem:[%s1742_s29 + $0x60] sm:$0xff] %v1148_v57   ;;  %v761_v22 = vadd.f32 %v760_v18, %v730_v15 }
  0xeb   : > { %v1758_v58 = vpop.f32.mrf.mxu2  ;;  %v1764_v63 = vpop.f32.mrf.mxu3 }
  0xec   : > { %v553_v59 = vpop.f32.mrf.mxu0  ;;  %v1760_v60 = vpop.f32.mrf.mxu1 }
  0xed   : > { %v1093_v61 = vpack.c.bf16 %v553_v59, %v551_v53  ;;  %v1113_v62 = vpack.c.bf16 %v1760_v60, %v1748_v54  ;;  %v731_v19 = vmul.f32 %v553_v59, %v553_v59  ;;  %v692_v27 = vadd.f32 %v691_v20, %v553_v59 }
  0xee   : > { %v737_v53 = vmul.f32 %v1734_v48, %v1734_v48  ;;  %v738_v59 = vmul.f32 %v1748_v54, %v1748_v54 }
  0xef   : > { %1180 = vst [vmem:[%s1742_s29 + $0x8] sm:$0xff] %v1093_v61   ;;  %v762_v29 = vadd.f32 %v761_v22, %v731_v19 }
  0xf0   : > { %1184 = vst [vmem:[%s1742_s29 + $0x28] sm:$0xff] %v1113_v62  }
  0xf3   : > { %v1768_v0 = vpop.f32.mrf.mxu2  ;;  %v1774_v4 = vpop.f32.mrf.mxu3 }
  0xf4   : > { %v556_v1 = vpop.f32.mrf.mxu0  ;;  %v1770_v2 = vpop.f32.mrf.mxu1  ;;  %v1133_v3 = vpack.c.bf16 %v1768_v0, %v1758_v58  ;;  %v1153_v5 = vpack.c.bf16 %v1774_v4, %v1764_v63 }
  0xf5   : > { %v732_v23 = vmul.f32 %v556_v1, %v556_v1  ;;  %v693_v32 = vadd.f32 %v692_v27, %v556_v1 }
  0xf6   : > { %1188 = vst [vmem:[%s1742_s29 + $0x48] sm:$0xff] %v1133_v3   ;;  %v739_v3 = vmul.f32 %v1760_v60, %v1760_v60 }
  0xf7   : > { %1192 = vst [vmem:[%s1742_s29 + $0x68] sm:$0xff] %v1153_v5   ;;  %v763_v33 = vadd.f32 %v762_v29, %v732_v23 }
  0xfb   : > { %v1780_v6 = vpop.f32.mrf.mxu2  ;;  %v1786_v12 = vpop.f32.mrf.mxu3 }
  0xfc   : > { %v558_v7 = vpop.f32.mrf.mxu0  ;;  %v1782_v8 = vpop.f32.mrf.mxu1 }
  0xfd   : > { %v1098_v10 = vpack.c.bf16 %v558_v7, %v556_v1  ;;  %v1118_v11 = vpack.c.bf16 %v1782_v8, %v1770_v2  ;;  %v733_v30 = vmul.f32 %v558_v7, %v558_v7  ;;  %v694_v35 = vadd.f32 %v693_v32, %v558_v7 }
  0xff   : > { %1181 = vst [vmem:[%s1742_s29 + $0x10] sm:$0xff] %v1098_v10   ;;  %v764_v36 = vadd.f32 %v763_v33, %v733_v30  ;;  %v740_v10 = vmul.f32 %v1770_v2, %v1770_v2 }
 0x100   : > { %1185 = vst [vmem:[%s1742_s29 + $0x30] sm:$0xff] %v1118_v11  }
 0x103   : > { %v1790_v21 = vpop.f32.mrf.mxu2  ;;  %v1796_v28 = vpop.f32.mrf.mxu3 }
 0x104   : > { %v561_v24 = vpop.f32.mrf.mxu0  ;;  %v1792_v25 = vpop.f32.mrf.mxu1  ;;  %v1138_v26 = vpack.c.bf16 %v1790_v21, %v1780_v6  ;;  %v1158_v31 = vpack.c.bf16 %v1796_v28, %v1786_v12 }
 0x105   : > { %v734_v34 = vmul.f32 %v561_v24, %v561_v24  ;;  %v695_v9 = vadd.f32 %v694_v35, %v561_v24 }
 0x106   : > { %1189 = vst [vmem:[%s1742_s29 + $0x50] sm:$0xff] %v1138_v26  }
 0x107   : > { %1193 = vst [vmem:[%s1742_s29 + $0x70] sm:$0xff] %v1158_v31   ;;  %v765_v38 = vadd.f32 %v764_v36, %v734_v34 }
 0x10b   : > { %v1802_v37 = vpop.f32.mrf.mxu2  ;;  %v1806_v45 = vpop.f32.mrf.mxu3 }
 0x10c   : > { %v563_v39 = vpop.f32.mrf.mxu0  ;;  %v583_v40 = vpop.f32.mrf.mxu1 }
 0x10d   : > { %v1103_v41 = vpack.c.bf16 %v563_v39, %v561_v24  ;;  %v696_v42 = vadd.f32 %v695_v9, %v563_v39  ;;  %v735_v43 = vmul.f32 %v563_v39, %v563_v39  ;;  %v1123_v44 = vpack.c.bf16 %v583_v40, %v1792_v25 }
 0x10f   : > { %1182 = vst [vmem:[%s1742_s29 + $0x18] sm:$0xff] %v1103_v41   ;;  %v697_v49 = vadd.f32 %v696_v42, %v1730_v46  ;;  %v766_v50 = vadd.f32 %v765_v38, %v735_v43 }
 0x110   : > { %1186 = vst [vmem:[%s1742_s29 + $0x38] sm:$0xff] %v1123_v44  }
 0x111   : > { %v698_v55 = vadd.f32 %v697_v49, %v1734_v48  ;;  %v767_v57 = vadd.f32 %v766_v50, %v736_v47 }
 0x113   : > { %v699_v46 = vadd.f32 %v698_v55, %v1748_v54  ;;  %v768_v61 = vadd.f32 %v767_v57, %v737_v53  ;;  %v603_v62 = vpop.f32.mrf.mxu2  ;;  %v1827_v7 = vpop.f32.mrf.mxu3 }
 0x114   : > { %v1143_v1 = vpack.c.bf16 %v603_v62, %v1802_v37  ;;  %v1163_v54 = vpack.c.bf16 %v1827_v7, %v1806_v45 }
 0x115   : > { %v769_v5 = vadd.f32 %v768_v61, %v738_v59  ;;  %v700_v48 = vadd.f32 %v699_v46, %v1760_v60  ;;  %v741_v60 = vmul.f32 %v1782_v8, %v1782_v8 }
 0x116   : > { %1190 = vst [vmem:[%s1742_s29 + $0x58] sm:$0xff] %v1143_v1  }
 0x117   : > { %v701_v11 = vadd.f32 %v700_v48, %v1770_v2  ;;  %v770_v13 = vadd.f32 %v769_v5, %v739_v3  ;;  %1194 = vst [vmem:[%s1742_s29 + $0x78] sm:$0xff] %v1163_v54  }
 0x119   : > { %v702_v14 = vadd.f32 %v701_v11, %v1782_v8  ;;  %v771_v15 = vadd.f32 %v770_v13, %v740_v10 }
 0x11a   : > { %1414 = shalt.err (!%p1411_p8)
}
 0x11b   : > { %s1495_s13 = smov 64   ;;  %s1496_s20 = smov 4   ;;  %v703_v2 = vadd.f32 %v702_v14, %v1792_v25  ;;  %v742_v8 = vmul.f32 %v1792_v25, %v1792_v25  ;;  %v772_v16 = vadd.f32 %v771_v15, %v741_v60  ;;  %v743_v20 = vmul.f32 %v583_v40, %v583_v40 }
 0x11c   : > { %1229 = dma.vmem_to_hbm [thread:$0]  (%p1579_p11), %s1829_s14, 2048, %s1831_s10, %s799_s28, %s1495_s13, %s1495_s13, %s1496_s20   ;;  %v744_v22 = vmul.f32 %v1732_v17, %v1732_v17  ;;  %v745_v26 = vmul.f32 %v1746_v52, %v1746_v52  ;;  %v746_v30 = vmul.f32 %v1758_v58, %v1758_v58  ;;  %v747_v32 = vmul.f32 %v1768_v0, %v1768_v0 }
 0x11d   : > { %v773_v18 = vadd.f32 %v772_v16, %v742_v8  ;;  %v704_v19 = vadd.f32 %v703_v2, %v583_v40  ;;  %v749_v9 = vmul.f32 %v1790_v21, %v1790_v21  ;;  %v750_v40 = vmul.f32 %v1802_v37, %v1802_v37  ;;  %s971_s3 = sshll.u32 %s1627_s25, 3  ;;  %s1008_s27 = sshll.u32 %s1548_s22, 3 }
 0x11e   : > { %v751_v42 = vmul.f32 %v603_v62, %v603_v62  ;;  %v752_v43 = vmul.f32 %v1738_v51, %v1738_v51  ;;  %v753_v47 = vmul.f32 %v1752_v56, %v1752_v56  ;;  %v754_v50 = vmul.f32 %v1764_v63, %v1764_v63  ;;  %s831_s16 = scalar_lea.hbm %s1944_s5, %s1008_s27  ;;  %s286_s26 = scalar_lea.vmem [#allocation9], %s971_s3 }
 0x11f   : > { %v705_v23 = vadd.f32 %v704_v19, %v1732_v17  ;;  %v774_v24 = vadd.f32 %v773_v18, %v743_v20  ;;  %v748_v17 = vmul.f32 %v1780_v6, %v1780_v6  ;;  %v755_v55 = vmul.f32 %v1774_v4, %v1774_v4  ;;  %s833_s8 = sshll.u32 %s286_s26, 4  ;;  %s835_s14 = sshll.u32 %s831_s16, 4  ;;  %s834_s8 = int_to_ptr.vmem [resolvable:$true] %s833_s8  ;;  %s836_s14 = int_to_ptr.hbm [resolvable:$true] %s835_s14 }
 0x120   : > { %s804_s22 = scalar_lea.sflag [#allocation10], %s1627_s25  ;;  %s1429_s10 = sshra.s32 %s836_s14, 4  ;;  %s1430_s10 = int_to_ptr.hbm [resolvable:$true] %s1429_s10 }
 0x121   : > { %v706_v27 = vadd.f32 %v705_v23, %v1746_v52  ;;  %v775_v29 = vadd.f32 %v774_v24, %v744_v22  ;;  %s1431_s28 = scalar_lea.hbm %s1430_s10, 8  ;;  %s1435_s15 = scalar_lea.hbm %s1944_s5, 16 }
 0x122   : > { %p1432_p9 = scmp.ne.s32.totalorder %s1430_s10, %s1431_s28  ;;  %p1436_p2 = scmp.lt.s32.totalorder %s1430_s10, %s1944_s5 }
 0x123   : > { %v707_v25 = vadd.f32 %v706_v27, %v1758_v58  ;;  %v776_v31 = vadd.f32 %v775_v29, %v745_v26  ;;  %p1437_p3 = scmp.lt.s32.totalorder %s1435_s15, %s1431_s28 }
 0x124   : > { %p1433_p10 = pnand %p1432_p9, %p1579_p11 }
 0x125   : > { %v777_v33 = vadd.f32 %v776_v31, %v746_v30  ;;  %v708_v34 = vadd.f32 %v707_v25, %v1768_v0  ;;  %p1438_p4 = por %p1437_p3, %p1436_p2 }
 0x126   : > { %p1434_p1 = pneg %p1433_p10 }
 0x127   : > { %v709_v35 = vadd.f32 %v708_v34, %v1780_v6  ;;  %v778_v36 = vadd.f32 %v777_v33, %v747_v32 }
 0x128   : > { %p1439_p6 = pnand %p1438_p4, %p1434_p1 }
 0x129   : > { %v710_v52 = vadd.f32 %v709_v35, %v1790_v21  ;;  %v779_v38 = vadd.f32 %v778_v36, %v748_v17 }
 0x12b   : > { %v780_v58 = vadd.f32 %v779_v38, %v749_v9  ;;  %v711_v39 = vadd.f32 %v710_v52, %v1802_v37 }
 0x12d   : > { %v781_v41 = vadd.f32 %v780_v58, %v750_v40  ;;  %v712_v0 = vadd.f32 %v711_v39, %v603_v62 }
 0x12f   : > { %v713_v6 = vadd.f32 %v712_v0, %v1738_v51  ;;  %v782_v44 = vadd.f32 %v781_v41, %v751_v42  ;;  %v756_v51 = vmul.f32 %v1786_v12, %v1786_v12 }
 0x131   : > { %v714_v21 = vadd.f32 %v713_v6, %v1752_v56  ;;  %v783_v49 = vadd.f32 %v782_v44, %v752_v43 }
 0x133   : > { %v715_v37 = vadd.f32 %v714_v21, %v1764_v63  ;;  %v784_v53 = vadd.f32 %v783_v49, %v753_v47  ;;  %v757_v63 = vmul.f32 %v1796_v28, %v1796_v28 }
 0x135   : > { %v785_v57 = vadd.f32 %v784_v53, %v754_v50  ;;  %v716_v59 = vadd.f32 %v715_v37, %v1774_v4  ;;  %v758_v4 = vmul.f32 %v1806_v45, %v1806_v45 }
 0x137   : > { %v717_v46 = vadd.f32 %v716_v59, %v1786_v12  ;;  %v786_v56 = vadd.f32 %v785_v57, %v755_v55  ;;  %v759_v12 = vmul.f32 %v1827_v7, %v1827_v7 }
 0x139   : > { %v718_v61 = vadd.f32 %v717_v46, %v1796_v28  ;;  %v787_v62 = vadd.f32 %v786_v56, %v756_v51 }
 0x13b   : > { %v788_v1 = vadd.f32 %v787_v62, %v757_v63  ;;  %v719_v3 = vadd.f32 %v718_v61, %v1806_v45 }
 0x13d   : > { %v789_v5 = vadd.f32 %v788_v1, %v758_v4  ;;  %v720_v48 = vadd.f32 %v719_v3, %v1827_v7 }
 0x13f   : > { %v721_v54 = vrot.slane %v720_v48, 4  ;;  %v790_v10 = vadd.f32 %v789_v5, %v759_v12 }
 0x141   : > { %v722_v11 = vadd.f32 %v721_v54, %v720_v48  ;;  %v791_v13 = vrot.slane %v790_v10, 4 }
 0x143   : > { %v723_v28 = vrot.slane %v722_v11, 2  ;;  %v792_v60 = vadd.f32 %v791_v13, %v790_v10 }
 0x145   : > { %v724_v14 = vadd.f32 %v723_v28, %v722_v11  ;;  %v793_v15 = vrot.slane %v792_v60, 2 }
 0x147   : > { %v725_v45 = vrot.slane %v724_v14, 1  ;;  %v794_v2 = vadd.f32 %v793_v15, %v792_v60 }
 0x149   : > { %v726_v7 = vadd.f32 %v725_v45, %v724_v14  ;;  %v795_v8 = vrot.slane %v794_v2, 1 }
 0x14b   : > { %v796_v16 = vadd.f32 %v795_v8, %v794_v2  ;;  %727 = vst [vmem:[%s286_s26] sm:$0x1] %v726_v7 }
 0x14d   : > { %797 = vst [vmem:[%s286_s26 + $0x1] sm:$0x1] %v796_v16 }
 0x14e   : > { %1442 = shalt.err (!%p1439_p6)
}
 0x14f   : > { %1230 = dma.vmem_to_hbm [thread:$0]  (%p1579_p11), %s834_s8, 128, %s836_s14, %s804_s22  }
 0x150 PF: > { %s847_s25 = sand.u32 1, %s1477_s18   ;;  %p1958_p13 = scmp.ge.s32.totalorder %s1489_s21, 2 }
 0x151   : > { %s848_s11 = scalar_lea.sflag [#allocation4], %s847_s25 }
 0x152   : > { %p1245_p0 = pnand %p1958_p13, %p1583_p12 }
 0x154   : > { %p1246_p7 = pneg %p1245_p0 }
 0x156   : > { %1468 = dma.done.wait (%p1246_p7), %s848_s11, 2048  }
 0x157   : > { %1470 = vsyncadd (%p1246_p7), %s848_s11, 4294965248  ;;  %s858_s9 = scalar_lea.sflag [#allocation10], %s847_s25 }
 0x158   : > { %1472 = dma.done.wait (%p1246_p7), %s858_s9, 128  }
 0x159   : > { %1474 = vsyncadd (%p1246_p7), %s858_s9, 4294967168  ;;  %s1959_s13 = sld [smem:[#allocation15_spill]]  ;;  %p23_p11 = scmp.ge.s32.totalorder %s1552_s24, 4  }
 0x15a   : > { %s1960_s20 = sld [smem:[#allocation16_spill]]  ;;  %s1961_s18 = smov %s1481_s19 }
 0x15b   : > { %s1963_s21 = smov %s1552_s24  ;;  %25 = sbr.rel (!%p23_p11) target bundleno = 11 (0xb), region = 106 }
 0x15f   : > { %s1962_s19 = smov %s1959_s13 }
 0x160   :  { %864 = vsyncpa [#allocation3], 1 }
 0x161   :  { %866 = vsyncpa [#allocation3 + $0x1], 1 }
 0x162   :  { %867 = vsyncpa [#allocation6], 1 }
 0x163   :  { %868 = vsyncpa [#allocation4], 1 }
 0x164   :  { %870 = vsyncpa [#allocation4 + $0x1], 1 }
 0x165   :  { %871 = vsyncpa [#allocation10], 1 }
 0x166   :  { %873 = vsyncpa [#allocation10 + $0x1], 1 }

</bundles_post_ra>
